<compile_context>
chip_gen: v7x
topology: tpu7x:2x2x1
jax: 0.10.0
libtpu: 0.0.40
codegen_flags: <defaults>
</compile_context>

<pallas_src>
import functools

import jax
import jax.numpy as jnp
from jax.experimental import pallas as pl
from jax.experimental.pallas import tpu as pltpu

_LANE = 128
_MIN_TILE = 16  # bf16 sublane pack (also a multiple of the f32 pack of 8)


def _round_up(x: int, m: int) -> int:
    return ((x + m - 1) // m) * m


def _cdiv(a: int, b: int) -> int:
    return -(-a // b)


def _qnetwork_kernel(x_ref, w1_ref, b1_ref, w2_ref, b2_ref, w3_ref, b3_ref,
                     o_ref):
    """Fused 3-layer MLP on one batch tile; weights/biases are VMEM-resident."""
    cd = w1_ref.dtype  # MXU input dtype (bf16 by default); acc stays f32.

    h1 = jnp.dot(x_ref[...], w1_ref[...], preferred_element_type=jnp.float32)
    h1 = jnp.maximum(h1 + b1_ref[...], 0.0)

    h2 = jnp.dot(h1.astype(cd), w2_ref[...], preferred_element_type=jnp.float32)
    h2 = jnp.maximum(h2 + b2_ref[...], 0.0)

    out = jnp.dot(h2.astype(cd), w3_ref[...], preferred_element_type=jnp.float32)
    o_ref[...] = (out + b3_ref[...]).astype(o_ref.dtype)
    # TODO(synk): for the action-selection path, fuse argmax over actions here
    # and emit a [tb, 1] index tile instead of the lane-padded Q matrix.


def prepare_qnetwork_params(w1, b1, w2, b2, w3, b3,
                            compute_dtype=jnp.bfloat16):
    """Pad + cast parameters ONCE (call outside the per-step jit).

    Weights are [in, out]; output dims are padded to multiples of 128 lanes and
    cast to `compute_dtype`.  Biases stay f32, stored as (1, out_pad).  The
    contraction dim of w1 (state_dim) is deliberately left unpadded.
    """
    state_dim, hidden_dim = w1.shape
    action_dim = w3.shape[1]
    h_pad = _round_up(hidden_dim, _LANE)
    a_pad = _round_up(action_dim, _LANE)

    f32 = jnp.float32
    w1_p = jnp.pad(w1.astype(f32),
                   ((0, 0), (0, h_pad - hidden_dim))).astype(compute_dtype)
    w2_p = jnp.pad(w2.astype(f32),
                   ((0, h_pad - hidden_dim),
                    (0, h_pad - hidden_dim))).astype(compute_dtype)
    w3_p = jnp.pad(w3.astype(f32),
                   ((0, h_pad - hidden_dim),
                    (0, a_pad - action_dim))).astype(compute_dtype)
    b1_p = jnp.pad(b1.astype(f32).reshape(1, -1),
                   ((0, 0), (0, h_pad - hidden_dim)))
    b2_p = jnp.pad(b2.astype(f32).reshape(1, -1),
                   ((0, 0), (0, h_pad - hidden_dim)))
    b3_p = jnp.pad(b3.astype(f32).reshape(1, -1),
                   ((0, 0), (0, a_pad - action_dim)))
    return w1_p, b1_p, w2_p, b2_p, w3_p, b3_p


def _choose_batch_tiling(batch: int, block_batch: int):
    """Pick (tile_rows, padded_batch): fat tiles, <=1 tile of padding waste,
    and an even number of >=2 steps when the batch is big enough (v7x 2-TC)."""
    n_tiles = max(1, _cdiv(batch, block_batch))
    if n_tiles == 1 and batch >= 256:
        n_tiles = 2
    if n_tiles > 1 and n_tiles % 2 == 1:
        n_tiles += 1
    tb = _round_up(_cdiv(batch, n_tiles), _MIN_TILE)
    tb = min(tb, 2048)  # VMEM insurance on v5e's 16 MiB default scoped limit
    n_tiles = _cdiv(batch, tb)
    if n_tiles > 1 and n_tiles % 2 == 1:
        n_tiles += 1
    return tb, n_tiles * tb


@functools.partial(jax.jit, static_argnames=("action_dim", "block_batch"))
def qnetwork_forward(x, w1_p, b1_p, w2_p, b2_p, w3_p, b3_p, *,
                     action_dim, block_batch=1024):
    """y = relu(x@w1+b1) -> relu(.@w2+b2) -> .@w3+b3, tiled over batch.

    Expects parameters already padded/cast by `prepare_qnetwork_params`.
    """
    batch, state_dim = x.shape
    h_pad = w1_p.shape[1]
    a_pad = w3_p.shape[1]

    tb, b_pad = _choose_batch_tiling(batch, block_batch)
    grid = (b_pad // tb,)

    # Stream x in the weights' compute dtype; pad only the batch axis.
    x_p = x.astype(w1_p.dtype)
    if b_pad != batch:
        x_p = jnp.pad(x_p, ((0, b_pad - batch), (0, 0)))

    itemsize = jnp.dtype(w1_p.dtype).itemsize
    flops = 2 * b_pad * (state_dim * h_pad + h_pad * h_pad + h_pad * a_pad)
    bytes_accessed = (
        b_pad * state_dim * itemsize                                   # x stream
        + (state_dim * h_pad + h_pad * h_pad + h_pad * a_pad) * itemsize  # weights
        + (2 * h_pad + a_pad) * 4                                      # f32 biases
        + b_pad * a_pad * 4)                                           # f32 output

    out_padded = pl.pallas_call(
        _qnetwork_kernel,
        out_shape=jax.ShapeDtypeStruct((b_pad, a_pad), jnp.float32),
        grid=grid,
        in_specs=[
            # x: streamed per batch tile (double-buffered by the pipeline);
            # last dim equals the full array dim, so no lane padding needed.
            pl.BlockSpec((tb, state_dim), lambda i: (i, 0)),
            # Weights / biases: full-array blocks, VMEM-resident across steps.
            pl.BlockSpec((state_dim, h_pad), lambda i: (0, 0)),
            pl.BlockSpec((1, h_pad), lambda i: (0, 0)),
            pl.BlockSpec((h_pad, h_pad), lambda i: (0, 0)),
            pl.BlockSpec((1, h_pad), lambda i: (0, 0)),
            pl.BlockSpec((h_pad, a_pad), lambda i: (0, 0)),
            pl.BlockSpec((1, a_pad), lambda i: (0, 0)),
        ],
        out_specs=pl.BlockSpec((tb, a_pad), lambda i: (i, 0)),
        compiler_params=pltpu.CompilerParams(
            dimension_semantics=("parallel",)),
        cost_estimate=pl.CostEstimate(
            flops=flops, transcendentals=0, bytes_accessed=bytes_accessed),
    )(x_p, w1_p, b1_p, w2_p, b2_p, w3_p, b3_p)

    return out_padded[:batch, :action_dim]


def _orthogonal(key, out_features, in_features):
    """Matches torch.nn.init.orthogonal_ semantics (QR of a Gaussian)."""
    return jax.nn.initializers.orthogonal()(key, (out_features, in_features),
                                            jnp.float32)


def init_qnetwork_params(key, state_dim, hidden_dim, action_dim):
    k1, k2, k3 = jax.random.split(key, 3)
    # PyTorch Linear stores weight as [out, in]; transpose to [in, out] so the
    # kernel computes x @ W.
    w1 = _orthogonal(k1, hidden_dim, state_dim).T       # [state_dim, hidden]
    w2 = _orthogonal(k2, hidden_dim, hidden_dim).T      # [hidden, hidden]
    w3 = _orthogonal(k3, action_dim, hidden_dim).T      # [hidden, action_dim]
    b1 = jnp.zeros((hidden_dim,), jnp.float32)
    b2 = jnp.zeros((hidden_dim,), jnp.float32)
    b3 = jnp.zeros((action_dim,), jnp.float32)
    return w1, b1, w2, b2, w3, b3


def _reference_forward(x, w1, b1, w2, b2, w3, b3, compute_dtype=jnp.float32):
    """Pure-JAX reference; compute_dtype=bf16 mimics the kernel's MXU casts."""
    f32 = jnp.float32

    def mm(a, w):
        return jnp.dot(a.astype(compute_dtype).astype(f32),
                       w.astype(compute_dtype).astype(f32))

    h1 = jnp.maximum(mm(x, w1) + b1[None, :], 0.0)
    h2 = jnp.maximum(mm(h1, w2) + b2[None, :], 0.0)
    return mm(h2, w3) + b3[None, :]


if __name__ == "__main__":
    # Small, deterministic example consistent with QNetwork(args):
    #   args.state_dim=16, args.hidden_dim=32, args.action_dim=4, batch=8
    batch, state_dim, hidden_dim, action_dim = 8, 16, 32, 4

    key = jax.random.PRNGKey(0)
    k_x, k_params = jax.random.split(key)

    x = jax.random.normal(k_x, (batch, state_dim), jnp.float32)
    raw_params = init_qnetwork_params(k_params, state_dim, hidden_dim,
                                      action_dim)
    params = prepare_qnetwork_params(*raw_params)   # pad + cast ONCE

    q_values = qnetwork_forward(x, *params, action_dim=action_dim)
    jax.block_until_ready(q_values)
    assert q_values.shape == (batch, action_dim)

    # Tight check vs. a reference that performs the same bf16 input casts.
    ref_bf16 = _reference_forward(x, *raw_params, compute_dtype=jnp.bfloat16)
    assert jnp.allclose(q_values, ref_bf16, atol=2e-3, rtol=2e-3)
    # Loose sanity check vs. the pure f32 reference.
    ref_f32 = _reference_forward(x, *raw_params, compute_dtype=jnp.float32)
    assert jnp.allclose(q_values, ref_f32, atol=5e-2, rtol=5e-2)

    # Multi-tile path: batch=1024 -> grid=(2,) on the parallel batch axis.
    big_batch = 1024
    xb = jax.random.normal(jax.random.PRNGKey(1), (big_batch, state_dim),
                           jnp.float32)
    qb = qnetwork_forward(xb, *params, action_dim=action_dim)
    jax.block_until_ready(qb)
    assert qb.shape == (big_batch, action_dim)
    assert jnp.allclose(
        qb, _reference_forward(xb, *raw_params, compute_dtype=jnp.bfloat16),
        atol=2e-3, rtol=2e-3)

    print("KERNEL_OK")
</pallas_src>

<mosaic_0001>
module attributes {stable_mosaic.version = 11 : i64} {
  func.func @_qnetwork_kernel(%arg0: i32, %arg1: memref<16x16xbf16, #tpu.memory_space<vmem>>, %arg2: memref<16x128xbf16, #tpu.memory_space<vmem>>, %arg3: memref<1x128xf32, #tpu.memory_space<vmem>>, %arg4: memref<128x128xbf16, #tpu.memory_space<vmem>>, %arg5: memref<1x128xf32, #tpu.memory_space<vmem>>, %arg6: memref<128x128xbf16, #tpu.memory_space<vmem>>, %arg7: memref<1x128xf32, #tpu.memory_space<vmem>>, %arg8: memref<16x128xf32, #tpu.memory_space<vmem>>) attributes {dimension_semantics = [#tpu.dimension_semantics<parallel>], iteration_bounds = array<i64: 1>, scalar_prefetch = 0 : i64, scratch_operands = 0 : i64, tpu.core_type = #tpu.core_type<tc>, window_params = [{transform_indices = @transform_0, window_bounds = array<i64: 16, 16>}, {pipeline_mode = #tpu.pipeline_mode<synchronous>, transform_indices = @transform_1, window_bounds = array<i64: 16, 128>}, {pipeline_mode = #tpu.pipeline_mode<synchronous>, transform_indices = @transform_2, window_bounds = array<i64: 1, 128>}, {pipeline_mode = #tpu.pipeline_mode<synchronous>, transform_indices = @transform_3, window_bounds = array<i64: 128, 128>}, {pipeline_mode = #tpu.pipeline_mode<synchronous>, transform_indices = @transform_4, window_bounds = array<i64: 1, 128>}, {pipeline_mode = #tpu.pipeline_mode<synchronous>, transform_indices = @transform_5, window_bounds = array<i64: 128, 128>}, {pipeline_mode = #tpu.pipeline_mode<synchronous>, transform_indices = @transform_6, window_bounds = array<i64: 1, 128>}, {transform_indices = @transform_7, window_bounds = array<i64: 16, 128>}]} {
    %c0 = arith.constant 0 : index
    %c0_0 = arith.constant 0 : index
    %0 = vector.load %arg1[%c0, %c0_0] : memref<16x16xbf16, #tpu.memory_space<vmem>>, vector<16x16xbf16>
    %c0_1 = arith.constant 0 : index
    %c0_2 = arith.constant 0 : index
    %1 = vector.load %arg2[%c0_1, %c0_2] : memref<16x128xbf16, #tpu.memory_space<vmem>>, vector<16x128xbf16>
    %cst = arith.constant dense<0.000000e+00> : vector<16x128xf32>
    %2 = tpu.matmul %0, %1, %cst {dimension_numbers = #tpu.dot_dimension_numbers<[1], [0], [0], [1], [0, 0, 1, 1], [], []>} : vector<16x16xbf16>, vector<16x128xbf16>, vector<16x128xf32> -> vector<16x128xf32>
    %c0_3 = arith.constant 0 : index
    %c0_4 = arith.constant 0 : index
    %3 = vector.load %arg3[%c0_3, %c0_4] : memref<1x128xf32, #tpu.memory_space<vmem>>, vector<1x128xf32>
    %4 = vector.broadcast %3 : vector<1x128xf32> to vector<16x128xf32>
    %5 = arith.addf %2, %4 : vector<16x128xf32>
    %cst_5 = arith.constant 0.000000e+00 : f32
    %6 = vector.broadcast %cst_5 : f32 to vector<16x128xf32>
    %7 = arith.maximumf %5, %6 : vector<16x128xf32>
    %8 = arith.truncf %7 : vector<16x128xf32> to vector<16x128xbf16>
    %c0_6 = arith.constant 0 : index
    %c0_7 = arith.constant 0 : index
    %9 = vector.load %arg4[%c0_6, %c0_7] : memref<128x128xbf16, #tpu.memory_space<vmem>>, vector<128x128xbf16>
    %cst_8 = arith.constant dense<0.000000e+00> : vector<16x128xf32>
    %10 = tpu.matmul %8, %9, %cst_8 {dimension_numbers = #tpu.dot_dimension_numbers<[1], [0], [0], [1], [0, 0, 1, 1], [], []>} : vector<16x128xbf16>, vector<128x128xbf16>, vector<16x128xf32> -> vector<16x128xf32>
    %c0_9 = arith.constant 0 : index
    %c0_10 = arith.constant 0 : index
    %11 = vector.load %arg5[%c0_9, %c0_10] : memref<1x128xf32, #tpu.memory_space<vmem>>, vector<1x128xf32>
    %12 = vector.broadcast %11 : vector<1x128xf32> to vector<16x128xf32>
    %13 = arith.addf %10, %12 : vector<16x128xf32>
    %cst_11 = arith.constant 0.000000e+00 : f32
    %14 = vector.broadcast %cst_11 : f32 to vector<16x128xf32>
    %15 = arith.maximumf %13, %14 : vector<16x128xf32>
    %16 = arith.truncf %15 : vector<16x128xf32> to vector<16x128xbf16>
    %c0_12 = arith.constant 0 : index
    %c0_13 = arith.constant 0 : index
    %17 = vector.load %arg6[%c0_12, %c0_13] : memref<128x128xbf16, #tpu.memory_space<vmem>>, vector<128x128xbf16>
    %cst_14 = arith.constant dense<0.000000e+00> : vector<16x128xf32>
    %18 = tpu.matmul %16, %17, %cst_14 {dimension_numbers = #tpu.dot_dimension_numbers<[1], [0], [0], [1], [0, 0, 1, 1], [], []>} : vector<16x128xbf16>, vector<128x128xbf16>, vector<16x128xf32> -> vector<16x128xf32>
    %c0_15 = arith.constant 0 : index
    %c0_16 = arith.constant 0 : index
    %19 = vector.load %arg7[%c0_15, %c0_16] : memref<1x128xf32, #tpu.memory_space<vmem>>, vector<1x128xf32>
    %20 = vector.broadcast %19 : vector<1x128xf32> to vector<16x128xf32>
    %21 = arith.addf %18, %20 : vector<16x128xf32>
    %c0_17 = arith.constant 0 : index
    %c0_18 = arith.constant 0 : index
    %22 = vector.load %arg8[%c0_17, %c0_18] : memref<16x128xf32, #tpu.memory_space<vmem>>, vector<16x128xf32>
    tpu.vector_store %arg8[%c0_17, %c0_18], %21 {strides = array<i32>} : memref<16x128xf32, #tpu.memory_space<vmem>>, vector<16x128xf32>,
    return
  }
  func.func @transform_0(%arg0: i32) -> (i32, i32) {
    %c0_i32 = arith.constant 0 : i32
    %c0_i32_0 = arith.constant 0 : i32
    return %arg0, %c0_i32 : i32, i32
  }
  func.func @transform_1(%arg0: i32) -> (i32, i32) {
    %c0_i32 = arith.constant 0 : i32
    %c0_i32_0 = arith.constant 0 : i32
    %c0_i32_1 = arith.constant 0 : i32
    return %c0_i32, %c0_i32_0 : i32, i32
  }
  func.func @transform_2(%arg0: i32) -> (i32, i32) {
    %c0_i32 = arith.constant 0 : i32
    %c0_i32_0 = arith.constant 0 : i32
    %c0_i32_1 = arith.constant 0 : i32
    return %c0_i32, %c0_i32_0 : i32, i32
  }
  func.func @transform_3(%arg0: i32) -> (i32, i32) {
    %c0_i32 = arith.constant 0 : i32
    %c0_i32_0 = arith.constant 0 : i32
    %c0_i32_1 = arith.constant 0 : i32
    return %c0_i32, %c0_i32_0 : i32, i32
  }
  func.func @transform_4(%arg0: i32) -> (i32, i32) {
    %c0_i32 = arith.constant 0 : i32
    %c0_i32_0 = arith.constant 0 : i32
    %c0_i32_1 = arith.constant 0 : i32
    return %c0_i32, %c0_i32_0 : i32, i32
  }
  func.func @transform_5(%arg0: i32) -> (i32, i32) {
    %c0_i32 = arith.constant 0 : i32
    %c0_i32_0 = arith.constant 0 : i32
    %c0_i32_1 = arith.constant 0 : i32
    return %c0_i32, %c0_i32_0 : i32, i32
  }
  func.func @transform_6(%arg0: i32) -> (i32, i32) {
    %c0_i32 = arith.constant 0 : i32
    %c0_i32_0 = arith.constant 0 : i32
    %c0_i32_1 = arith.constant 0 : i32
    return %c0_i32, %c0_i32_0 : i32, i32
  }
  func.func @transform_7(%arg0: i32) -> (i32, i32) {
    %c0_i32 = arith.constant 0 : i32
    %c0_i32_0 = arith.constant 0 : i32
    return %arg0, %c0_i32 : i32, i32
  }
}

</mosaic_0001>

<bundles_post_ra>
// kernel: qnetwork_forward.1
= control target key start
LH: loop header
LB: loop body
LE: loop exit
PB: predicated region body
PF: predicated region fallthrough
CT: control target
= control target key end

     0   :  { %12 = vsyncpa [#allocation3], 0  ;;  %s631_s0 = inlined_call_operand.vmem [shape: bf16[16,16], index: 0, kind: input, shape index: {}]   ;;  %s632_s1 = inlined_call_operand.vmem [shape: bf16[16,128], index: 1, kind: input, shape index: {}]   ;;  %s633_s2 = inlined_call_operand.vmem [shape: f32[1,128], index: 2, kind: input, shape index: {}]   ;;  %s634_s3 = inlined_call_operand.hbm [shape: bf16[128,128], index: 3, kind: input, shape index: {}]   ;;  %s635_s4 = inlined_call_operand.vmem [shape: f32[1,128], index: 4, kind: input, shape index: {}]   ;;  %s636_s5 = inlined_call_operand.hbm [shape: bf16[128,128], index: 5, kind: input, shape index: {}]   ;;  %s637_s6 = inlined_call_operand.vmem [shape: f32[1,128], index: 6, kind: input, shape index: {}]   ;;  %s638_s7 = inlined_call_operand.vmem [shape: f32[16,128], index: 7, kind: output, shape index: {}]  }
   0x1   :  { %13 = vsyncpa [#allocation5], 0  ;;  %s520_s24 = smov [#allocation2]   ;;  %s472_s28 = scalar_lea.hbm %s634_s3, 1024 }
   0x2   :  { %s25_s25 = sshll.u32 %s520_s24, 4  ;;  %p473_p0 = scmp.ne.s32.totalorder %s634_s3, %s472_s28  ;;  %s26_s25 = int_to_ptr.vmem [resolvable:$true] %s25_s25 }
   0x3   :  { %p476_p1 = scmp.lt.u32.totalorder %s472_s28, %s634_s3 }
   0x5   :  { %p478_p2 = pnand %p476_p1, %p473_p0 }
   0x7   :  { %481 = shalt.err (!%p478_p2)
}
   0x8   :  { %s482_s10 = scalar_lea.vmem %s26_s25, 1024  ;;  %p487_p4 = scmp.lt.s32.totalorder %s26_s25, %s26_s25 }
   0x9   :  { %p483_p3 = scmp.ne.s32.totalorder %s26_s25, %s482_s10  ;;  %p488_p5 = scmp.lt.s32.totalorder %s482_s10, %s482_s10 }
   0xb   :  { %p489_p6 = por %p488_p5, %p487_p4 }
   0xd   :  { %p490_p7 = pnand %p489_p6, %p483_p3 }
   0xf   :  { %493 = shalt.err (!%p490_p7)
}
  0x10   :  { %s521_s11 = smov 64   ;;  %s522_s12 = smov 4  }
  0x11   :  { %31 = dma.hbm_to_vmem [thread:$0]  %s634_s3, 1024, %s26_s25, [#allocation3], %s521_s11, %s521_s11, %s522_s12  }
  0x12   :  { %s523_s15 = smov [#allocation4]   ;;  %s494_s19 = scalar_lea.hbm %s636_s5, 1024 }
  0x13   :  { %s39_s16 = sshll.u32 %s523_s15, 4  ;;  %p495_p8 = scmp.ne.s32.totalorder %s636_s5, %s494_s19  ;;  %s40_s16 = int_to_ptr.vmem [resolvable:$true] %s39_s16 }
  0x14   :  { %p498_p9 = scmp.lt.u32.totalorder %s494_s19, %s636_s5 }
  0x16   :  { %p500_p10 = pnand %p498_p9, %p495_p8 }
  0x18   :  { %503 = shalt.err (!%p500_p10)
}
  0x19   :  { %s504_s24 = scalar_lea.vmem %s40_s16, 1024  ;;  %p509_p12 = scmp.lt.s32.totalorder %s40_s16, %s40_s16 }
  0x1a   :  { %p505_p11 = scmp.ne.s32.totalorder %s40_s16, %s504_s24  ;;  %p510_p13 = scmp.lt.s32.totalorder %s504_s24, %s504_s24 }
  0x1c   :  { %p511_p0 = por %p510_p13, %p509_p12 }
  0x1e   :  { %p512_p1 = pnand %p511_p0, %p505_p11 }
  0x20   :  { %515 = shalt.err (!%p512_p1)
}
  0x21   :  { %45 = dma.hbm_to_vmem [thread:$0]  %s636_s5, 1024, %s40_s16, [#allocation5], %s521_s11, %s521_s11, %s522_s12  }
  0x22   :  { %516 = dma.done.wait [#allocation3], 1024  }
  0x23   :  { %517 = vsyncadd [#allocation3], 4294966272 }
  0x24   :  { %518 = dma.done.wait [#allocation5], 1024  }
  0x25   :  { %519 = vsyncadd [#allocation5], 4294966272  ;;  %v524_v0 = vmov 0.0   ;;  %vm525_vm0 = vmmov 0   ;;  %v454_v1 = vld [vmem:[%s632_s1] sm:$0xff]   ;;  %vm77_vm1 = vcmask 130048  }
  0x26   :  { %402 = vmatprep.subr.bf16.mxu0 %v524_v0  ;;  %404 = vmatprep.mubr.msk.bf16.mxu0 %vm525_vm0, %v524_v0  ;;  %v455_v2 = vld [vmem:[%s631_s0] sm:$0xff]   ;;  %v457_v4 = vld [vmem:[#allocation2 + $0x8] sm:$0xff]   ;;  %v458_v5 = vld [vmem:[#allocation2 + $0x10] sm:$0xff]  }
  0x27   :  { %408 = vmatprep.subr.bf16.mxu1 %v524_v0  ;;  %424 = vmatprep.mubr.msk.bf16.mxu1 %vm525_vm0, %v524_v0  ;;  %v456_v3 = vld [vmem:[#allocation2] sm:$0xff]   ;;  %v459_v6 = vld [vmem:[#allocation2 + $0x18] sm:$0xff]   ;;  %v461_v8 = vld [vmem:[#allocation2 + $0x28] sm:$0xff]  }
  0x28   :  { %403 = vmatpush3.bf16.msra.mxu0 %v454_v1  ;;  %409 = vmatpush3.bf16.msra.mxu1 %v456_v3  ;;  %v460_v7 = vld [vmem:[#allocation2 + $0x20] sm:$0xff]   ;;  %v462_v9 = vld [vmem:[#allocation2 + $0x30] sm:$0xff]   ;;  %v463_v10 = vld [vmem:[#allocation2 + $0x38] sm:$0xff]  }
  0x29   :  { %428 = vmatprep.subr.bf16.mxu0 %v524_v0  ;;  %410 = vmatprep.subr.bf16.mxu1 %v524_v0  ;;  %v464_v11 = vld [vmem:[#allocation4] sm:$0xff]   ;;  %v465_v12 = vld [vmem:[#allocation4 + $0x8] sm:$0xff]   ;;  %v466_v13 = vld [vmem:[#allocation4 + $0x10] sm:$0xff]  }
  0x2a   :  { %v467_v14 = vld [vmem:[#allocation4 + $0x18] sm:$0xff]   ;;  %v468_v15 = vld [vmem:[#allocation4 + $0x20] sm:$0xff]   ;;  %v469_v16 = vld [vmem:[#allocation4 + $0x28] sm:$0xff]  }
  0x2b   :  { %405 = vmatmul.mubr.msk.bf16.vlgmr.msra.gmra.mrb[0].mxu0 %vm77_vm1, %v455_v2  ;;  %v360_v17 = vld [vmem:[%s633_s2] ss:$0 sm:$0xff]  ;;  %v470_v27 = vld [vmem:[#allocation4 + $0x30] sm:$0xff]   ;;  %v471_v28 = vld [vmem:[#allocation4 + $0x38] sm:$0xff]  }
  0x2c   :  { %444 = vmatprep.mubr.msk.bf16.mxu0 %vm525_vm0, %v524_v0  ;;  %411 = vmatpush3.bf16.msra.mxu1 %v457_v4  ;;  %v364_v29 = vld [vmem:[%s635_s4] ss:$0 sm:$0xff] }
  0x2d   :  { %412 = vmatprep.subr.bf16.mxu1 %v524_v0  ;;  %429 = vmatpush3.bf16.msra.mxu0 %v464_v11  ;;  %v373_v39 = vld [vmem:[%s637_s6] ss:$0 sm:$0xff] }
  0x2e   :  { %430 = vmatprep.subr.bf16.mxu0 %v524_v0 }
  0x30   :  { %413 = vmatpush3.bf16.msra.mxu1 %v458_v5 }
  0x31   :  { %414 = vmatprep.subr.bf16.mxu1 %v524_v0  ;;  %431 = vmatpush3.bf16.msra.mxu0 %v465_v12 }
  0x32   :  { %432 = vmatprep.subr.bf16.mxu0 %v524_v0 }
  0x34   :  { %415 = vmatpush3.bf16.msra.mxu1 %v459_v6 }
  0x35   :  { %416 = vmatprep.subr.bf16.mxu1 %v524_v0  ;;  %433 = vmatpush3.bf16.msra.mxu0 %v466_v13 }
  0x36   :  { %434 = vmatprep.subr.bf16.mxu0 %v524_v0 }
  0x38   :  { %417 = vmatpush3.bf16.msra.mxu1 %v460_v7 }
  0x39   :  { %418 = vmatprep.subr.bf16.mxu1 %v524_v0  ;;  %435 = vmatpush3.bf16.msra.mxu0 %v467_v14 }
  0x3a   :  { %436 = vmatprep.subr.bf16.mxu0 %v524_v0 }
  0x3c   :  { %419 = vmatpush3.bf16.msra.mxu1 %v461_v8 }
  0x3d   :  { %420 = vmatprep.subr.bf16.mxu1 %v524_v0  ;;  %437 = vmatpush3.bf16.msra.mxu0 %v468_v15 }
  0x3e   :  { %438 = vmatprep.subr.bf16.mxu0 %v524_v0 }
  0x40   :  { %421 = vmatpush3.bf16.msra.mxu1 %v462_v9 }
  0x41   :  { %422 = vmatprep.subr.bf16.mxu1 %v524_v0  ;;  %439 = vmatpush3.bf16.msra.mxu0 %v469_v16 }
  0x42   :  { %440 = vmatprep.subr.bf16.mxu0 %v524_v0 }
  0x44   :  { %423 = vmatpush3.bf16.msra.mxu1 %v463_v10 }
  0x45   :  { %441 = vmatpush3.bf16.msra.mxu0 %v470_v27 }
  0x46   :  { %442 = vmatprep.subr.bf16.mxu0 %v524_v0 }
  0x49   :  { %443 = vmatpush3.bf16.msra.mxu0 %v471_v28 }
  0xfe   :  { %v115_v18 = vpop.f32.mrb[0].mxu0 }
  0xff   :  { %v116_v19 = vadd.f32 %v360_v17, %v115_v18  ;;  %v406_v20 = vpop.f32.mrb[1].mxu0 }
 0x100   :  { %v118_v21 = vpop.f32.mrb[2].mxu0 }
 0x101   :  { %v119_v22 = vadd.f32 %v360_v17, %v118_v21  ;;  %v407_v23 = vpop.f32.mrb[3].mxu0  ;;  %v122_v24 = vmax.f32 %v116_v19, 0.0 }
 0x103   :  { %v123_v25 = vmax.f32 %v119_v22, 0.0 }
 0x105   :  { %v124_v26 = vpack.c.bf16 %v123_v25, %v122_v24 }
 0x107   :  { %425 = vmatmul.mubr.bf16.vlgmr.msra.gmra.mrb[0].mxu1 %v124_v26 }
 0x1da   :  { %v230_v30 = vpop.f32.mrb[0].mxu1 }
 0x1db   :  { %v231_v31 = vadd.f32 %v364_v29, %v230_v30  ;;  %v426_v32 = vpop.f32.mrb[1].mxu1 }
 0x1dc   :  { %v233_v33 = vpop.f32.mrb[2].mxu1 }
 0x1dd   :  { %v234_v34 = vadd.f32 %v364_v29, %v233_v33  ;;  %v427_v35 = vpop.f32.mrb[3].mxu1  ;;  %v237_v36 = vmax.f32 %v231_v31, 0.0 }
 0x1df   :  { %v238_v37 = vmax.f32 %v234_v34, 0.0 }
 0x1e1   :  { %v239_v38 = vpack.c.bf16 %v238_v37, %v237_v36 }
 0x1e3   :  { %445 = vmatmul.mubr.bf16.vlgmr.msra.gmra.mrb[4].mxu0 %v239_v38 }
 0x2b6   :  { %v345_v40 = vpop.f32.mrb[4].mxu0 }
 0x2b7   :  { %v346_v41 = vadd.f32 %v373_v39, %v345_v40  ;;  %v446_v42 = vpop.f32.mrb[5].mxu0 }
 0x2b8   :  { %v348_v43 = vpop.f32.mrb[6].mxu0 }
 0x2b9   :  { %352 = vst [vmem:[%s638_s7] sm:$0xff] %v346_v41  ;;  %v349_v44 = vadd.f32 %v373_v39, %v348_v43  ;;  %v447_v45 = vpop.f32.mrb[7].mxu0 }
 0x2bb   :  { %353 = vst [vmem:[%s638_s7 + $0x8] sm:$0xff] %v349_v44 }
 0x2bc   :  { %358 = vsyncpa [#allocation3], 1 }
 0x2bd   :  { %359 = vsyncpa [#allocation5], 1 }

</bundles_post_ra>
